<compile_context>
chip_gen: v7x
topology: tpu7x:2x2x1
jax: 0.10.0
libtpu: 0.0.40
codegen_flags: <defaults>
</compile_context>

<pallas_src>
import jax
import jax.numpy as jnp
from jax.experimental import pallas as pl
from jax.experimental.pallas import tpu as pltpu


def _tlu_kernel(x_ref, tau_ref, o_ref):
    # (TR, HW) elementwise max with (TR, 1) per-row threshold broadcast
    # across the lane axis.
    o_ref[...] = jnp.maximum(x_ref[...], tau_ref[...])


def tlu_forward(
    x_nchw: jax.Array,
    tau: jax.Array,
    *,
    row_tile: int | None = None,
    target_block_bytes: int = 2 * 1024 * 1024,
) -> jax.Array:
    """Pallas TLU forward: max(x, tau) with per-channel tau.

    Args:
      x_nchw: input of shape (N, C, H, W).
      tau:    per-channel threshold of shape (1, C, 1, 1) (torch param layout).
      row_tile: optional explicit row-tile override (testing / tuning).
      target_block_bytes: per-input-block VMEM budget used to size row tiles.

    Returns:
      max(x, tau), same shape and dtype as x_nchw.
    """
    N, C, H, W = x_nchw.shape
    rows = N * C
    hw = H * W

    # Free, contiguous reshape: channels stay grouped per row, spatial on lanes.
    x2d = x_nchw.reshape(rows, hw)
    # Tiny per-row threshold column (N*C elements): row r has channel r % C.
    tau_col = jnp.broadcast_to(
        tau.reshape(1, C).astype(x2d.dtype), (N, C)
    ).reshape(rows, 1)

    # Row-tile selection: ~target_block_bytes per input block so
    # (in + out) x 2 double buffers stays well under the smallest scoped-VMEM
    # default (16 MiB on v5e, 32 MiB on v6e/v7x).
    if row_tile is None:
        elem_bytes = jnp.dtype(x2d.dtype).itemsize
        tr = max(1, target_block_bytes // max(1, hw * elem_bytes))
        if tr >= rows:
            tr = rows                      # whole slab fits in one block
        else:
            tr = max(8, (tr // 8) * 8)     # sublane-aligned row tile
    else:
        tr = min(row_tile, rows)

    grid = (pl.cdiv(rows, tr),)

    out2d = pl.pallas_call(
        _tlu_kernel,
        out_shape=jax.ShapeDtypeStruct((rows, hw), x2d.dtype),
        grid=grid,
        in_specs=[
            pl.BlockSpec((tr, hw), lambda i: (i, 0)),   # activation row tile
            pl.BlockSpec((tr, 1), lambda i: (i, 0)),    # per-row tau column
        ],
        out_specs=pl.BlockSpec((tr, hw), lambda i: (i, 0)),
        compiler_params=pltpu.CompilerParams(
            dimension_semantics=("parallel",),          # shard row tiles on v7x
        ),
    )(x2d, tau_col)

    return out2d.reshape(N, C, H, W)


def make_tlu_params(num_features: int, dtype=jnp.float32) -> jax.Array:
    # nn.init.constant_(self.tau, -1)
    return jnp.full((1, num_features, 1, 1), -1.0, dtype=dtype)


if __name__ == "__main__":
    key = jax.random.PRNGKey(0)

    # Primary small test, matching the module spec (batch=2, channels=4, 16x16).
    N, C, H, W = 2, 4, 16, 16
    x = jax.random.normal(key, (N, C, H, W), dtype=jnp.float32)
    tau = make_tlu_params(C)

    y = tlu_forward(x, tau)
    jax.block_until_ready(y)
    y_ref = jnp.maximum(x, tau)
    assert y.shape == x.shape and y.dtype == x.dtype
    assert jnp.allclose(y, y_ref), "mismatch vs reference (f32)"

    # Exercise the multi-block (tiled, pipelined) path with a forced small tile.
    k2 = jax.random.PRNGKey(1)
    x2 = jax.random.normal(k2, (2, 16, 16, 16), dtype=jnp.float32)
    tau2 = make_tlu_params(16)
    y2 = tlu_forward(x2, tau2, row_tile=8)          # grid=(4,)
    jax.block_until_ready(y2)
    assert jnp.allclose(y2, jnp.maximum(x2, tau2)), "mismatch vs reference (tiled)"

    # dtype preservation (bf16 in -> bf16 out, tau cast inside wrapper).
    xb = jax.random.normal(jax.random.PRNGKey(2), (N, C, H, W)).astype(jnp.bfloat16)
    yb = tlu_forward(xb, tau)
    jax.block_until_ready(yb)
    assert yb.dtype == jnp.bfloat16
    assert jnp.allclose(yb, jnp.maximum(xb, tau.astype(jnp.bfloat16))), \
        "mismatch vs reference (bf16)"

    print("KERNEL_OK")
</pallas_src>

<mosaic_0001>
module attributes {stable_mosaic.version = 11 : i64} {
  func.func @_tlu_kernel(%arg0: i32, %arg1: memref<8x256xf32, #tpu.memory_space<vmem>>, %arg2: memref<8x1xf32, #tpu.memory_space<vmem>>, %arg3: memref<8x256xf32, #tpu.memory_space<vmem>>) attributes {dimension_semantics = [#tpu.dimension_semantics<parallel>], iteration_bounds = array<i64: 1>, scalar_prefetch = 0 : i64, scratch_operands = 0 : i64, tpu.core_type = #tpu.core_type<tc>, window_params = [{transform_indices = @transform_0, window_bounds = array<i64: 8, 256>}, {transform_indices = @transform_1, window_bounds = array<i64: 8, 1>}, {transform_indices = @transform_2, window_bounds = array<i64: 8, 256>}]} {
    %c0 = arith.constant 0 : index
    %c0_0 = arith.constant 0 : index
    %0 = vector.load %arg1[%c0, %c0_0] : memref<8x256xf32, #tpu.memory_space<vmem>>, vector<8x256xf32>
    %c0_1 = arith.constant 0 : index
    %c0_2 = arith.constant 0 : index
    %1 = vector.load %arg2[%c0_1, %c0_2] : memref<8x1xf32, #tpu.memory_space<vmem>>, vector<8x1xf32>
    %2 = vector.broadcast %1 : vector<8x1xf32> to vector<8x256xf32>
    %3 = arith.maximumf %0, %2 : vector<8x256xf32>
    %c0_3 = arith.constant 0 : index
    %c0_4 = arith.constant 0 : index
    %4 = vector.load %arg3[%c0_3, %c0_4] : memref<8x256xf32, #tpu.memory_space<vmem>>, vector<8x256xf32>
    tpu.vector_store %arg3[%c0_3, %c0_4], %3 {strides = array<i32>} : memref<8x256xf32, #tpu.memory_space<vmem>>, vector<8x256xf32>,
    return
  }
  func.func @transform_0(%arg0: i32) -> (i32, i32) {
    %c0_i32 = arith.constant 0 : i32
    %c0_i32_0 = arith.constant 0 : i32
    return %arg0, %c0_i32 : i32, i32
  }
  func.func @transform_1(%arg0: i32) -> (i32, i32) {
    %c0_i32 = arith.constant 0 : i32
    %c0_i32_0 = arith.constant 0 : i32
    return %arg0, %c0_i32 : i32, i32
  }
  func.func @transform_2(%arg0: i32) -> (i32, i32) {
    %c0_i32 = arith.constant 0 : i32
    %c0_i32_0 = arith.constant 0 : i32
    return %arg0, %c0_i32 : i32, i32
  }
}

</mosaic_0001>

<bundles_post_ra>
// kernel: tpu_custom_call.1
= control target key start
LH: loop header
LB: loop body
LE: loop exit
PB: predicated region body
PF: predicated region fallthrough
CT: control target
= control target key end

     0   :  { %7 = vsyncpa [#allocation3], 0  ;;  %s148_s0 = inlined_call_operand.hbm [shape: f32[8,256], index: 0, kind: input, shape index: {}]   ;;  %s149_s1 = inlined_call_operand.vmem [shape: f32[8,1], index: 1, kind: input, shape index: {}]   ;;  %s150_s2 = inlined_call_operand.hbm [shape: f32[8,256], index: 2, kind: output, shape index: {}]  }
   0x1   :  { %8 = vsyncpa [#allocation4], 0  ;;  %s103_s9 = smov [#allocation2]   ;;  %s55_s13 = scalar_lea.hbm %s148_s0, 256 }
   0x2   :  { %s15_s10 = sshll.u32 %s103_s9, 4  ;;  %p56_p0 = scmp.ne.s32.totalorder %s148_s0, %s55_s13  ;;  %s16_s10 = int_to_ptr.vmem [resolvable:$true] %s15_s10 }
   0x3   :  { %p59_p1 = scmp.lt.u32.totalorder %s55_s13, %s148_s0 }
   0x5   :  { %p61_p2 = pnand %p59_p1, %p56_p0 }
   0x7   :  { %64 = shalt.err (!%p61_p2)
}
   0x8   :  { %s65_s18 = scalar_lea.vmem %s16_s10, 256  ;;  %p70_p4 = scmp.lt.s32.totalorder %s16_s10, %s16_s10 }
   0x9   :  { %p66_p3 = scmp.ne.s32.totalorder %s16_s10, %s65_s18  ;;  %p71_p5 = scmp.lt.s32.totalorder %s65_s18, %s65_s18 }
   0xb   :  { %p72_p6 = por %p71_p5, %p70_p4 }
   0xd   :  { %p73_p7 = pnand %p72_p6, %p66_p3 }
   0xf   :  { %76 = shalt.err (!%p73_p7)
}
  0x10   :  { %18 = dma.hbm_to_vmem [thread:$0]  %s148_s0, 256, %s16_s10, [#allocation3]  }
  0x11   :  { %99 = dma.done.wait [#allocation3], 256  }
  0x12   :  { %100 = vsyncadd [#allocation3], 4294967040  ;;  %v104_v0 = vmov 0   ;;  %v26_v1 = vld [vmem:[%s149_s1] sm:$0xff]  ;;  %v25_v3 = vld [vmem:[#allocation2 + $0x8] sm:$0xff]  ;;  %s105_s23 = smov [#allocation5]  }
  0x13   :  { %54 = vset.pattern.permute.xlu0 %v104_v0  ;;  %v24_v2 = vld [vmem:[#allocation2] sm:$0xff]  ;;  %s42_s24 = sshll.u32 %s105_s23, 4  ;;  %s43_s24 = int_to_ptr.vmem [resolvable:$true] %s42_s24 }
  0x14   :  { %29 = vperm.xlu0 %54, %v26_v1   ;;  %s77_s0 = scalar_lea.vmem %s43_s24, 256  ;;  %p82_p9 = scmp.lt.s32.totalorder %s43_s24, %s43_s24 }
  0x15   :  { %p78_p8 = scmp.ne.s32.totalorder %s43_s24, %s77_s0  ;;  %p83_p10 = scmp.lt.s32.totalorder %s77_s0, %s77_s0 }
  0x17   :  { %p84_p11 = por %p83_p10, %p82_p9 }
  0x19   :  { %p85_p12 = pnand %p84_p11, %p78_p8 }
  0x93   :  { %v30_v4 = vpop.permute.xlu0 %29 }
  0x94   :  { %v32_v5 = vmax.f32 %v24_v2, %v30_v4  ;;  %v33_v6 = vmax.f32 %v25_v3, %v30_v4 }
  0x96   :  { %34 = vst [vmem:[#allocation5] sm:$0xff] %v32_v5  ;;  %35 = vst [vmem:[#allocation5 + $0x8] sm:$0xff] %v33_v6 }
  0x97   :  { %88 = shalt.err (!%p85_p12)
}
  0x98   :  { %s89_s26 = scalar_lea.hbm %s150_s2, 256 }
  0x99   :  { %p90_p13 = scmp.ne.s32.totalorder %s150_s2, %s89_s26  ;;  %p93_p0 = scmp.lt.u32.totalorder %s89_s26, %s150_s2 }
  0x9b   :  { %p95_p1 = pnand %p93_p0, %p90_p13 }
  0x9d   :  { %98 = shalt.err (!%p95_p1)
}
  0x9e   :  { %45 = dma.vmem_to_hbm [thread:$0]  %s43_s24, 256, %s150_s2, [#allocation4]  }
  0x9f   :  { %101 = dma.done.wait [#allocation4], 256  }
  0xa0   :  { %102 = vsyncadd [#allocation4], 4294967040 }
  0xa1   :  { %49 = vsyncpa [#allocation3], 1 }
  0xa2   :  { %50 = vsyncpa [#allocation4], 1 }

</bundles_post_ra>
